<compile_context>
chip_gen: v5e
topology: v5e:2x2
jax: 0.10.0
libtpu: 0.0.40
codegen_flags: <defaults>
</compile_context>

<pallas_src>
import functools

import jax
import jax.numpy as jnp
from jax.experimental import pallas as pl
from jax.experimental.pallas import tpu as pltpu

LANES = 128
SUBLANES = 8
TILE_ROWS = 1024           # rows per grid step; f32 tile = 512 KiB


def _focal_loss_kernel(x_ref, t_ref, out_ref, acc_ref, *, gamma, n_true,
                       tile_rows, tiles_per_part, need_mask):
    """Per-tile |x-t|^(gamma+1) partial sum; one reduce per partition."""
    p = pl.program_id(0)           # partition axis ("parallel")
    j = pl.program_id(1)           # tile-within-partition axis ("arbitrary")

    @pl.when(j == 0)
    def _():
        acc_ref[...] = jnp.zeros_like(acc_ref)

    x = x_ref[...].astype(jnp.float32)
    t = t_ref[...].astype(jnp.float32)
    err = jnp.abs(x - t)                               # VPU elementwise

    g = float(gamma)
    if g == int(g) and 0 <= int(g) <= 8:
        loss = err                                     # err ** (gamma + 1)
        for _ in range(int(g)):                        # via plain multiplies
            loss = loss * err
    else:
        loss = jnp.power(err, g) * err                 # non-integer fallback

    if need_mask:
        # Zero padded / out-of-range elements (ragged last tile only).
        row0 = (p * tiles_per_part + j) * tile_rows
        r = jax.lax.broadcasted_iota(jnp.int32, loss.shape, 0)
        c = jax.lax.broadcasted_iota(jnp.int32, loss.shape, 1)
        gidx = (row0 + r) * LANES + c
        loss = jnp.where(gidx < n_true, loss, 0.0)

    # Vector partial sum into a vreg-shaped accumulator (VPU adds, hidden
    # under the input DMA).
    acc_ref[...] += loss.reshape(-1, SUBLANES, LANES).sum(axis=0)

    @pl.when(j == pl.num_programs(1) - 1)
    def _():
        # Single expensive cross-lane/sublane reduce per partition.
        out_ref[0, 0] = jnp.sum(acc_ref[...])


def focal_loss_regression(inputs, targets, gamma=2.0, reduction="mean"):
    """JAX/Pallas equivalent of FocalLossRegression.forward."""
    assert inputs.shape == targets.shape
    if reduction not in ("mean", "sum"):
        # TODO(synk): reduction='none' (elementwise loss tensor) not wired to the kernel.
        raise NotImplementedError("only 'mean' and 'sum' reductions are implemented")

    n_true = int(inputs.size)
    x = inputs.reshape(-1)
    t = targets.reshape(-1)

    # Lane-dense (rows, 128) view.  Free (no HBM copy) when n % 1024 == 0;
    # otherwise pad minimally (rare fallback, masked in-kernel).
    chunk = SUBLANES * LANES
    rem = n_true % chunk
    if rem:
        x = jnp.pad(x, (0, chunk - rem))
        t = jnp.pad(t, (0, chunk - rem))
    rows = x.shape[0] // LANES                 # always a multiple of 8
    x2 = x.reshape(rows, LANES)
    t2 = t.reshape(rows, LANES)

    tile_rows = min(TILE_ROWS, rows)           # multiple of 8 by construction
    num_tiles = pl.cdiv(rows, tile_rows)

    # 2-way core split (engages both v7x TensorCores); only when it divides
    # evenly so no grid step ever maps to a fully out-of-bounds block.
    n_part = 2 if (num_tiles >= 2 and num_tiles % 2 == 0) else 1
    tiles_per_part = num_tiles // n_part

    covered = n_part * tiles_per_part * tile_rows * LANES
    need_mask = covered != n_true

    kernel = functools.partial(
        _focal_loss_kernel,
        gamma=float(gamma),
        n_true=n_true,
        tile_rows=tile_rows,
        tiles_per_part=tiles_per_part,
        need_mask=need_mask,
    )

    partials = pl.pallas_call(
        kernel,
        out_shape=jax.ShapeDtypeStruct((n_part, 1), jnp.float32),
        grid_spec=pltpu.PrefetchScalarGridSpec(
            num_scalar_prefetch=0,
            grid=(n_part, tiles_per_part),
            in_specs=[
                pl.BlockSpec((tile_rows, LANES),
                             lambda p, j: (p * tiles_per_part + j, 0)),
                pl.BlockSpec((tile_rows, LANES),
                             lambda p, j: (p * tiles_per_part + j, 0)),
            ],
            out_specs=pl.BlockSpec((1, 1), lambda p, j: (p, 0),
                                   memory_space=pltpu.SMEM),
            scratch_shapes=[pltpu.VMEM((SUBLANES, LANES), jnp.float32)],
        ),
        compiler_params=pltpu.CompilerParams(
            dimension_semantics=("parallel", "arbitrary"),
        ),
    )(x2, t2)

    total = jnp.sum(partials)
    if reduction == "mean":
        total = total / jnp.float32(n_true)
    return total.astype(inputs.dtype)


if __name__ == "__main__":
    key = jax.random.PRNGKey(0)

    def ref_loss(a, b, g=2.0):
        err = jnp.abs(a - b)
        return jnp.mean(jnp.power(err, g) * err)

    test_shapes = [
        (2, 4, 16, 16),    # original demo shape: single tile, single partition
        (8, 8, 64, 64),    # multi-tile: exercises the 2-way "parallel" split
        (3, 5, 10, 10),    # 1500 elems: ragged fallback path (pad + mask)
    ]
    for shape in test_shapes:
        key, k_in, k_tg = jax.random.split(key, 3)
        inputs = jax.random.normal(k_in, shape, dtype=jnp.float32)
        targets = jax.random.normal(k_tg, shape, dtype=jnp.float32)

        loss = focal_loss_regression(inputs, targets, gamma=2.0, reduction="mean")
        loss = jax.block_until_ready(loss)

        want = ref_loss(inputs, targets, 2.0)
        assert jnp.allclose(loss, want, rtol=1e-4, atol=1e-6), (shape, loss, want)

    print("KERNEL_OK")
</pallas_src>

<mosaic_0001>
module attributes {stable_mosaic.version = 11 : i64} {
  func.func @_focal_loss_kernel(%arg0: i32, %arg1: i32, %arg2: memref<16x128xf32, #tpu.memory_space<vmem>>, %arg3: memref<16x128xf32, #tpu.memory_space<vmem>>, %arg4: memref<1x1xf32, #tpu.memory_space<smem>>, %arg5: memref<8x128xf32, #tpu.memory_space<vmem>>) attributes {dimension_semantics = [#tpu.dimension_semantics<parallel>, #tpu.dimension_semantics<arbitrary>], iteration_bounds = array<i64: 1, 1>, scalar_prefetch = 0 : i64, scratch_operands = 1 : i64, tpu.core_type = #tpu.core_type<tc>, window_params = [{transform_indices = @transform_0, window_bounds = array<i64: 16, 128>}, {transform_indices = @transform_1, window_bounds = array<i64: 16, 128>}, {transform_indices = @transform_2, window_bounds = array<i64: 1, 1>}]} {
    %c0_i32 = arith.constant 0 : i32
    %0 = arith.cmpi eq, %arg1, %c0_i32 : i32
    %1 = arith.extui %0 : i1 to i32
    %c0_i32_0 = arith.constant 0 : i32
    %2 = arith.cmpi ne, %1, %c0_i32_0 : i32
    scf.if %2 {
      %cst_10 = arith.constant 0.000000e+00 : f32
      %17 = vector.broadcast %cst_10 : f32 to vector<8x128xf32>
      %c0_11 = arith.constant 0 : index
      %c0_12 = arith.constant 0 : index
      %18 = vector.load %arg5[%c0_11, %c0_12] : memref<8x128xf32, #tpu.memory_space<vmem>>, vector<8x128xf32>
      tpu.vector_store %arg5[%c0_11, %c0_12], %17 {strides = array<i32>} : memref<8x128xf32, #tpu.memory_space<vmem>>, vector<8x128xf32>,
    } else {
    }
    %c0 = arith.constant 0 : index
    %c0_1 = arith.constant 0 : index
    %3 = vector.load %arg2[%c0, %c0_1] : memref<16x128xf32, #tpu.memory_space<vmem>>, vector<16x128xf32>
    %c0_2 = arith.constant 0 : index
    %c0_3 = arith.constant 0 : index
    %4 = vector.load %arg3[%c0_2, %c0_3] : memref<16x128xf32, #tpu.memory_space<vmem>>, vector<16x128xf32>
    %5 = arith.subf %3, %4 : vector<16x128xf32>
    %6 = math.absf %5 : vector<16x128xf32>
    %7 = arith.mulf %6, %6 : vector<16x128xf32>
    %8 = arith.mulf %7, %6 : vector<16x128xf32>
    %c0_4 = arith.constant 0 : index
    %c0_5 = arith.constant 0 : index
    %9 = vector.load %arg5[%c0_4, %c0_5] : memref<8x128xf32, #tpu.memory_space<vmem>>, vector<8x128xf32>
    %10 = vector.shape_cast %8 : vector<16x128xf32> to vector<2x8x128xf32>
    %cst = arith.constant dense<0.000000e+00> : vector<8x128xf32>
    %11 = vector.multi_reduction <add>, %10, %cst [0] : vector<2x8x128xf32> to vector<8x128xf32>
    %12 = arith.addf %9, %11 : vector<8x128xf32>
    %c0_6 = arith.constant 0 : index
    %c0_7 = arith.constant 0 : index
    %13 = vector.load %arg5[%c0_6, %c0_7] : memref<8x128xf32, #tpu.memory_space<vmem>>, vector<8x128xf32>
    tpu.vector_store %arg5[%c0_6, %c0_7], %12 {strides = array<i32>} : memref<8x128xf32, #tpu.memory_space<vmem>>, vector<8x128xf32>,
    %c0_i32_8 = arith.constant 0 : i32
    %14 = arith.cmpi eq, %arg1, %c0_i32_8 : i32
    %15 = arith.extui %14 : i1 to i32
    %c0_i32_9 = arith.constant 0 : i32
    %16 = arith.cmpi ne, %15, %c0_i32_9 : i32
    scf.if %16 {
      %c0_10 = arith.constant 0 : index
      %c0_11 = arith.constant 0 : index
      %17 = vector.load %arg5[%c0_10, %c0_11] : memref<8x128xf32, #tpu.memory_space<vmem>>, vector<8x128xf32>
      %18 = vector.shape_cast %17 : vector<8x128xf32> to vector<1x8x128xf32>
      %cst_12 = arith.constant dense<0.000000e+00> : vector<1xf32>
      %19 = vector.multi_reduction <add>, %18, %cst_12 [1, 2] : vector<1x8x128xf32> to vector<1xf32>
      %20 = vector.shape_cast %19 : vector<1xf32> to vector<1x1x1xf32>
      %21 = vector.extract %20[0, 0, 0] : f32 from vector<1x1x1xf32>
      %c0_13 = arith.constant 0 : index
      %c0_14 = arith.constant 0 : index
      %22 = memref.load %arg4[%c0_13, %c0_14] : memref<1x1xf32, #tpu.memory_space<smem>>
      memref.store %21, %arg4[%c0_13, %c0_14] : memref<1x1xf32, #tpu.memory_space<smem>>
    } else {
    }
    return
  }
  func.func @transform_0(%arg0: i32, %arg1: i32) -> (i32, i32) {
    %c1_i32 = arith.constant 1 : i32
    %0 = arith.muli %arg0, %c1_i32 : i32
    %1 = arith.addi %0, %arg1 : i32
    %c0_i32 = arith.constant 0 : i32
    %c0_i32_0 = arith.constant 0 : i32
    return %1, %c0_i32 : i32, i32
  }
  func.func @transform_1(%arg0: i32, %arg1: i32) -> (i32, i32) {
    %c1_i32 = arith.constant 1 : i32
    %0 = arith.muli %arg0, %c1_i32 : i32
    %1 = arith.addi %0, %arg1 : i32
    %c0_i32 = arith.constant 0 : i32
    %c0_i32_0 = arith.constant 0 : i32
    return %1, %c0_i32 : i32, i32
  }
  func.func @transform_2(%arg0: i32, %arg1: i32) -> (i32, i32) {
    %c0_i32 = arith.constant 0 : i32
    %c0_i32_0 = arith.constant 0 : i32
    return %arg0, %c0_i32 : i32, i32
  }
}

</mosaic_0001>

<bundles_post_ra>
// kernel: tpu_custom_call.1
= control target key start
LH: loop header
LB: loop body
LE: loop exit
PB: predicated region body
PF: predicated region fallthrough
CT: control target
= control target key end

     0   :  { %7 = vsyncpa [#allocation4], 0  ;;  %s211_s0 = inlined_call_operand.hbm [shape: f32[16,128], index: 0, kind: input, shape index: {}]   ;;  %s212_s1 = inlined_call_operand.hbm [shape: f32[16,128], index: 1, kind: input, shape index: {}]   ;;  %s213_s2 = inlined_call_operand.hbm [shape: f32[1,1], index: 2, kind: output, shape index: {}]  }
   0x1   :  { %8 = vsyncpa [#allocation7], 0 }
   0x2   :  { %9 = vsyncpa [#allocation5], 0  ;;  %s18_s11 = sshll.u32 %s211_s0, 4  ;;  %s182_s12 = smov [#allocation3]   ;;  %s19_s11 = int_to_ptr.hbm [resolvable:$true] %s18_s11 }
   0x3   :  { %s20_s13 = sshll.u32 %s182_s12, 4  ;;  %s35_s16 = sshll.u32 %s212_s1, 4  ;;  %s21_s13 = int_to_ptr.vmem [resolvable:$true] %s20_s13  ;;  %s36_s16 = int_to_ptr.hbm [resolvable:$true] %s35_s16 }
   0x4   :  { %s183_s17 = smov 128   ;;  %s184_s18 = smov 8  }
   0x5   :  { %26 = dma.hbm_to_vmem [thread:$0]  %s19_s11, 256, %s21_s13, [#allocation4], %s183_s17, %s183_s17, %s184_s18  }
   0x6   :  { %s185_s19 = smov [#allocation6]  }
   0x7   :  { %s37_s20 = sshll.u32 %s185_s19, 4  ;;  %s38_s20 = int_to_ptr.vmem [resolvable:$true] %s37_s20 }
   0x8   :  { %43 = dma.hbm_to_vmem [thread:$0]  %s36_s16, 256, %s38_s20, [#allocation7], %s183_s17, %s183_s17, %s184_s18  }
   0x9   :  { %176 = dma.done.wait [#allocation4], 256  }
   0xa   :  { %177 = vsyncadd [#allocation4], 4294967040 }
   0xb   :  { %178 = dma.done.wait [#allocation7], 256  }
   0xc   :  { %179 = vsyncadd [#allocation7], 4294967040  ;;  %v61_v0 = vld [vmem:[#allocation3] sm:$0xff]  ;;  %v62_v1 = vld [vmem:[#allocation3 + $0x8] sm:$0xff]  ;;  %s97_s21 = sshll.u32 %s213_s2, 4  ;;  %s186_s23 = smov [#allocation8]   ;;  %s98_s21 = int_to_ptr.hbm [resolvable:$true] %s97_s21 }
   0xd   :  { %v63_v2 = vld [vmem:[#allocation6] sm:$0xff]  ;;  %v64_v3 = vld [vmem:[#allocation6 + $0x8] sm:$0xff] }
   0xe   :  { %v65_v4 = vsub.f32 %v61_v0, %v63_v2  ;;  %v66_v5 = vsub.f32 %v62_v1, %v64_v3 }
  0x10   :  { %v67_v6 = vand.u32 2147483647, %v65_v4  ;;  %v68_v7 = vand.u32 2147483647, %v66_v5 }
  0x12   :  { %v69_v8 = vmul.f32 %v67_v6, %v67_v6  ;;  %v70_v9 = vmul.f32 %v68_v7, %v68_v7 }
  0x14   :  { %v71_v10 = vmul.f32 %v69_v8, %v67_v6  ;;  %v72_v11 = vmul.f32 %v70_v9, %v68_v7 }
  0x16   :  { %v74_v12 = vadd.f32 %v72_v11, %v71_v10 }
  0x18   :  { %81 = vadd.xlane.f32.xlu0 %v74_v12 }
  0x8b   :  { %v82_v13 = vpop.xlane.xlu0 %81 }
  0x8c   :  { %v83_v14 = vrot.slane %v82_v13, 4 }
  0x8e   :  { %v84_v15 = vadd.f32 %v83_v14, %v82_v13 }
  0x90   :  { %v85_v16 = vrot.slane %v84_v15, 2 }
  0x92   :  { %v86_v17 = vadd.f32 %v85_v16, %v84_v15 }
  0x94   :  { %v87_v18 = vrot.slane %v86_v17, 1 }
  0x96   :  { %v88_v19 = vadd.f32 %v87_v18, %v86_v17 }
  0x98   :  { %109 = vpush %v88_v19 }
  0xc9   :  { %s110_s22 = spop %109 }
  0xca   :  { %91 = sst [smem:[#allocation8]] %s110_s22 }
  0xcb   :  { %100 = dma.smem_to_hbm %s186_s23, 16, %s98_s21, [#allocation5]  }
  0xcc   :  { %180 = dma.done.wait [#allocation5], 16  }
  0xcd   :  { %181 = vsyncadd [#allocation5], 4294967280 }
  0xce   :  { %105 = sfence }
  0xcf   :  { %106 = vsyncpa [#allocation4], 1 }
  0xd0   :  { %107 = vsyncpa [#allocation7], 1 }
  0xd1   :  { %108 = vsyncpa [#allocation5], 1 }

</bundles_post_ra>
